<compile_context>
chip_gen: v6e
topology: v6e:2x2x1
jax: 0.10.0
libtpu: 0.0.40
codegen_flags: <defaults>
</compile_context>

<pallas_src>
import jax
import jax.numpy as jnp
from jax.experimental import pallas as pl
from jax.experimental.pallas import tpu as pltpu

BERT = 768
EMB = 32
NUM_RULE = 1
_VMEM_LIMIT = 32 * 1024 * 1024   # explicit: v5e scoped default is only 16 MiB


# ------------------------------------------------------------------ kernels

def _embed_pair_kernel(rule_ref, tgt_ref, w1_ref, b1_ref, w2_ref, b2_ref,
                       rule_o_ref, tgt_o_ref):
    # Shared 768 -> 32 (ReLU) -> 32 embedding MLP, applied to a block of rule rows
    # and a block of target rows in the same grid step.
    w1 = w1_ref[...]            # (768, 32) bf16 (MXU-native)
    b1 = b1_ref[...]            # (1, 32)   f32
    w2 = w2_ref[...]            # (32, 32)  f32
    b2 = b2_ref[...]            # (1, 32)   f32

    def mlp(x):                 # x: (rows, 768) bf16 -> (rows, 32) f32
        h = jnp.dot(x, w1, preferred_element_type=jnp.float32) + b1
        h = jnp.maximum(h, 0.0)
        return jnp.dot(h, w2, preferred_element_type=jnp.float32) + b2

    rule_o_ref[...] = mlp(rule_ref[...]).astype(rule_o_ref.dtype)
    tgt_o_ref[...] = mlp(tgt_ref[...]).astype(tgt_o_ref.dtype)


def _head_kernel(rule_emb_ref, mask_ref, tgt_ref,
                 dw1r_ref, dw1t_ref, db1_ref, dw2_ref, db2_ref,
                 jw1_ref, jb1_ref, jw2_ref, jb2_ref,
                 vote_ref):
    # rule_emb: (tm, K, 32) bf16, mask: (tm, K) f32, tgt: (tm, 32) bf16
    K = rule_emb_ref.shape[1]
    masked = rule_emb_ref[...].astype(jnp.float32) * mask_ref[...][:, :, None]
    # torch.mean(..., dim=-2) divides by K regardless of the mask sum
    rule_out = jnp.sum(masked, axis=1) * (1.0 / K)                      # (tm, 32)
    tgt = tgt_ref[...].astype(jnp.float32)

    # discovery_prob_embedding on cat([rule_out, tgt], -1): split-matmul avoids concat
    h = (jnp.dot(rule_out, dw1r_ref[...], preferred_element_type=jnp.float32)
         + jnp.dot(tgt, dw1t_ref[...], preferred_element_type=jnp.float32)
         + db1_ref[...])
    h = jnp.maximum(h, 0.0)
    d_out = jnp.dot(h, dw2_ref[...], preferred_element_type=jnp.float32) + db2_ref[...]

    # judger: 32 -> 32 (ReLU) -> 1
    jh = jnp.maximum(
        jnp.dot(d_out, jw1_ref[...], preferred_element_type=jnp.float32) + jb1_ref[...],
        0.0)
    vote = jnp.dot(jh, jw2_ref[...], preferred_element_type=jnp.float32) + jb2_ref[...]
    vote_ref[...] = vote.astype(vote_ref.dtype)


# ------------------------------------------------------------------ wrappers

def embed_pair(rule_flat, tgt_flat, K, w1, b1, w2, b2, row_budget=2048):
    """Shared embedding MLP over rule rows (M*K, 768) and target rows (M, 768)
    in a single pallas_call. Returns (rule_emb (M*K, 32) bf16, tgt_emb (M, 32) bf16)."""
    MK, D = rule_flat.shape
    M = tgt_flat.shape[0]
    assert MK == M * K and D == BERT

    # tm target rows + tm*K rule rows per grid step (~row_budget bf16 rows total).
    tm = max(8, (row_budget // (K + 1)) // 8 * 8)
    if M <= tm:
        tm = M                       # single block equal to the full array extent
    grid = pl.cdiv(M, tm)            # partial last block handled by Pallas masking

    rule_emb, tgt_emb = pl.pallas_call(
        _embed_pair_kernel,
        out_shape=(jax.ShapeDtypeStruct((MK, EMB), jnp.bfloat16),
                   jax.ShapeDtypeStruct((M, EMB), jnp.bfloat16)),
        grid_spec=pltpu.PrefetchScalarGridSpec(
            num_scalar_prefetch=0,
            grid=(grid,),
            in_specs=[
                pl.BlockSpec((tm * K, BERT), lambda i: (i, 0)),
                pl.BlockSpec((tm, BERT), lambda i: (i, 0)),
                pl.BlockSpec((BERT, EMB), lambda i: (0, 0)),
                pl.BlockSpec((1, EMB), lambda i: (0, 0)),
                pl.BlockSpec((EMB, EMB), lambda i: (0, 0)),
                pl.BlockSpec((1, EMB), lambda i: (0, 0)),
            ],
            out_specs=[pl.BlockSpec((tm * K, EMB), lambda i: (i, 0)),
                       pl.BlockSpec((tm, EMB), lambda i: (i, 0))],
        ),
        compiler_params=pltpu.CompilerParams(
            dimension_semantics=("parallel",),
            vmem_limit_bytes=_VMEM_LIMIT),
    )(rule_flat.astype(jnp.bfloat16), tgt_flat.astype(jnp.bfloat16),
      w1.astype(jnp.bfloat16), b1.reshape(1, EMB).astype(jnp.float32),
      w2.astype(jnp.float32), b2.reshape(1, EMB).astype(jnp.float32))
    return rule_emb, tgt_emb


def head(rule_emb, mask, tgt_emb, params, tm=1024):
    """Fused masked mean over K + discovery MLP + judger. Returns vote (M, 1) f32."""
    M, K, _ = rule_emb.shape
    if M <= tm:
        tm = M
    grid = pl.cdiv(M, tm)
    dw1 = params['disc_w1']
    return pl.pallas_call(
        _head_kernel,
        out_shape=jax.ShapeDtypeStruct((M, 1), jnp.float32),
        grid_spec=pltpu.PrefetchScalarGridSpec(
            num_scalar_prefetch=0,
            grid=(grid,),
            in_specs=[
                pl.BlockSpec((tm, K, EMB), lambda i: (i, 0, 0)),
                pl.BlockSpec((tm, K), lambda i: (i, 0)),
                pl.BlockSpec((tm, EMB), lambda i: (i, 0)),
                pl.BlockSpec((EMB, EMB), lambda i: (0, 0)),   # disc_w1[:32]
                pl.BlockSpec((EMB, EMB), lambda i: (0, 0)),   # disc_w1[32:]
                pl.BlockSpec((1, EMB), lambda i: (0, 0)),
                pl.BlockSpec((EMB, EMB), lambda i: (0, 0)),
                pl.BlockSpec((1, EMB), lambda i: (0, 0)),
                pl.BlockSpec((EMB, EMB), lambda i: (0, 0)),
                pl.BlockSpec((1, EMB), lambda i: (0, 0)),
                pl.BlockSpec((EMB, 1), lambda i: (0, 0)),
                pl.BlockSpec((1, 1), lambda i: (0, 0)),
            ],
            out_specs=pl.BlockSpec((tm, 1), lambda i: (i, 0)),
        ),
        compiler_params=pltpu.CompilerParams(
            dimension_semantics=("parallel",),
            vmem_limit_bytes=_VMEM_LIMIT),
    )(rule_emb, mask, tgt_emb,
      dw1[:EMB], dw1[EMB:],
      params['disc_b1'].reshape(1, EMB),
      params['disc_w2'], params['disc_b2'].reshape(1, EMB),
      params['judge_w1'], params['judge_b1'].reshape(1, EMB),
      params['judge_w2'], params['judge_b2'].reshape(1, 1))


# ------------------------------------------------------------------ full forward

def compute_l1_regularization(params, lambda_l1=1e-5):
    # rule_embedding and target_embedding share parameters -> counted once (like
    # nn.Module.parameters(), which de-duplicates).
    return lambda_l1 * sum(jnp.sum(jnp.abs(v)) for v in params.values())


def only_classify_forward(params, rule, target, mask=None, label=None,
                          embed_row_budget=2048, head_tm=1024):
    assert rule.shape[2] == NUM_RULE, 'The [NUM_RULE] is not matched.'
    assert target.shape[2] == NUM_RULE, 'The [NUM_RULE] is not matched.'
    B, T, R, K, D = rule.shape
    assert D == BERT and target.shape == (B, T, R, BERT)
    M = B * T * R

    # bf16 HBM-resident inputs for the mem-bound embedding read (f32 accumulation
    # inside the kernel). Slight numerics change vs. the f32 PyTorch reference.
    rule_flat = rule.reshape(M * K, D).astype(jnp.bfloat16)
    tgt_flat = target.reshape(M, D).astype(jnp.bfloat16)

    # shared rule / target embedding MLP (hot path) — one launch for both.
    rule_emb, tgt_emb = embed_pair(rule_flat, tgt_flat, K,
                                   params['emb_w1'], params['emb_b1'],
                                   params['emb_w2'], params['emb_b2'],
                                   row_budget=embed_row_budget)
    rule_emb = rule_emb.reshape(M, K, EMB)

    if mask is None:
        mask_flat = jnp.ones((M, K), jnp.float32)
    else:
        mask_flat = mask.reshape(M, K).astype(jnp.float32)

    vote = head(rule_emb, mask_flat, tgt_emb, params, tm=head_tm).reshape(B, T, R)
    s = jnp.mean(vote, axis=-1)            # (B, T)
    p = jax.nn.sigmoid(s)

    output = {'s': s, 'p': p, 'L1': compute_l1_regularization(params)}
    if label is not None:
        # nn.BCELoss: mean of -(y*log(p) + (1-y)*log(1-p)), logs clamped at -100
        logp = jnp.clip(jnp.log(p), -100.0)
        log1mp = jnp.clip(jnp.log1p(-p), -100.0)
        l_cls = jnp.mean(-(label * logp + (1.0 - label) * log1mp))
        output['L_cls'] = l_cls
        output['loss'] = l_cls + output['L1']
    else:
        output['L_cls'] = jnp.float32(-1.0)
        output['loss'] = output['L1']
    return output


# ------------------------------------------------------------------ reference / params

def _reference_forward(params, rule, target, mask=None):
    # Pure-JAX f32 reference mirroring the PyTorch module.
    def mlp(x, w1, b1, w2, b2):
        h = jnp.maximum(x @ w1 + b1, 0.0)
        return h @ w2 + b2
    r32, t32 = rule.astype(jnp.float32), target.astype(jnp.float32)
    emb = mlp(r32, params['emb_w1'], params['emb_b1'], params['emb_w2'], params['emb_b2'])
    if mask is not None:
        emb = emb * mask.astype(jnp.float32)[..., None]
    rule_out = jnp.mean(emb, axis=-2)
    tgt_emb = mlp(t32, params['emb_w1'], params['emb_b1'], params['emb_w2'], params['emb_b2'])
    cat = jnp.concatenate([rule_out, tgt_emb], axis=-1)
    d = mlp(cat, params['disc_w1'], params['disc_b1'], params['disc_w2'], params['disc_b2'])
    vote = mlp(d, params['judge_w1'], params['judge_b1'],
               params['judge_w2'], params['judge_b2'])[..., 0]
    s = jnp.mean(vote, axis=-1)
    return s, jax.nn.sigmoid(s)


def init_params(key):
    ks = jax.random.split(key, 12)

    def lin(kw, kb, fan_in, fan_out):
        bound = 1.0 / (fan_in ** 0.5)
        w = jax.random.uniform(kw, (fan_in, fan_out), jnp.float32, -bound, bound)
        b = jax.random.uniform(kb, (fan_out,), jnp.float32, -bound, bound)
        return w, b

    emb_w1, emb_b1 = lin(ks[0], ks[1], BERT, EMB)
    emb_w2, emb_b2 = lin(ks[2], ks[3], EMB, EMB)
    disc_w1, disc_b1 = lin(ks[4], ks[5], 2 * EMB, EMB)
    disc_w2, disc_b2 = lin(ks[6], ks[7], EMB, EMB)
    judge_w1, judge_b1 = lin(ks[8], ks[9], EMB, EMB)
    judge_w2, judge_b2 = lin(ks[10], ks[11], EMB, 1)
    return dict(emb_w1=emb_w1, emb_b1=emb_b1, emb_w2=emb_w2, emb_b2=emb_b2,
                disc_w1=disc_w1, disc_b1=disc_b1, disc_w2=disc_w2, disc_b2=disc_b2,
                judge_w1=judge_w1, judge_b1=judge_b1, judge_w2=judge_w2, judge_b2=judge_b2)


# ------------------------------------------------------------------ main

if __name__ == "__main__":
    key = jax.random.PRNGKey(0)
    kp, kr, kt, km, kl, kr2, kt2, km2 = jax.random.split(key, 8)
    params = init_params(kp)

    # Test 1: small shapes, single-block grid, with mask + label.
    B, T, K = 2, 4, 3
    rule = jax.random.normal(kr, (B, T, NUM_RULE, K, BERT), jnp.float32)
    target = jax.random.normal(kt, (B, T, NUM_RULE, BERT), jnp.float32)
    mask = (jax.random.uniform(km, (B, T, NUM_RULE, K)) > 0.3).astype(jnp.float32)
    label = (jax.random.uniform(kl, (B, T)) > 0.5).astype(jnp.float32)

    out = only_classify_forward(params, rule, target, mask=mask, label=label)
    jax.block_until_ready(out)
    assert out['s'].shape == (B, T) and out['p'].shape == (B, T)
    s_ref, p_ref = _reference_forward(params, rule, target, mask=mask)
    assert jnp.allclose(out['s'], s_ref, atol=5e-2, rtol=5e-2), "s mismatch vs reference"
    assert jnp.allclose(out['p'], p_ref, atol=5e-2, rtol=5e-2), "p mismatch vs reference"
    assert bool(jnp.isfinite(out['loss'])), "non-finite loss"

    # Test 2: exercise the multi-step grid + partial-last-block path (no pad copy).
    B2, T2, K2 = 3, 3, 5          # M = 9 rows, forced tiny tiles -> cdiv grid with remainder
    rule2 = jax.random.normal(kr2, (B2, T2, NUM_RULE, K2, BERT), jnp.float32)
    target2 = jax.random.normal(kt2, (B2, T2, NUM_RULE, BERT), jnp.float32)
    mask2 = (jax.random.uniform(km2, (B2, T2, NUM_RULE, K2)) > 0.3).astype(jnp.float32)
    out2 = only_classify_forward(params, rule2, target2, mask=mask2,
                                 embed_row_budget=48, head_tm=8)
    jax.block_until_ready(out2)
    s_ref2, p_ref2 = _reference_forward(params, rule2, target2, mask=mask2)
    assert jnp.allclose(out2['s'], s_ref2, atol=5e-2, rtol=5e-2), "s mismatch (partial blocks)"
    assert jnp.allclose(out2['p'], p_ref2, atol=5e-2, rtol=5e-2), "p mismatch (partial blocks)"

    print("KERNEL_OK")
</pallas_src>

<mosaic_0001>
module attributes {stable_mosaic.version = 11 : i64} {
  func.func @_embed_pair_kernel(%arg0: i32, %arg1: memref<24x768xbf16, #tpu.memory_space<vmem>>, %arg2: memref<8x768xbf16, #tpu.memory_space<vmem>>, %arg3: memref<768x32xbf16, #tpu.memory_space<vmem>>, %arg4: memref<1x32xf32, #tpu.memory_space<vmem>>, %arg5: memref<32x32xf32, #tpu.memory_space<vmem>>, %arg6: memref<1x32xf32, #tpu.memory_space<vmem>>, %arg7: memref<24x32xbf16, #tpu.memory_space<vmem>>, %arg8: memref<8x32xbf16, #tpu.memory_space<vmem>>) attributes {dimension_semantics = [#tpu.dimension_semantics<parallel>], iteration_bounds = array<i64: 1>, scalar_prefetch = 0 : i64, scratch_operands = 0 : i64, tpu.core_type = #tpu.core_type<tc>, window_params = [{transform_indices = @transform_0, window_bounds = array<i64: 24, 768>}, {transform_indices = @transform_1, window_bounds = array<i64: 8, 768>}, {pipeline_mode = #tpu.pipeline_mode<synchronous>, transform_indices = @transform_2, window_bounds = array<i64: 768, 32>}, {pipeline_mode = #tpu.pipeline_mode<synchronous>, transform_indices = @transform_3, window_bounds = array<i64: 1, 32>}, {pipeline_mode = #tpu.pipeline_mode<synchronous>, transform_indices = @transform_4, window_bounds = array<i64: 32, 32>}, {pipeline_mode = #tpu.pipeline_mode<synchronous>, transform_indices = @transform_5, window_bounds = array<i64: 1, 32>}, {transform_indices = @transform_6, window_bounds = array<i64: 24, 32>}, {transform_indices = @transform_7, window_bounds = array<i64: 8, 32>}]} {
    %c0 = arith.constant 0 : index
    %c0_0 = arith.constant 0 : index
    %0 = vector.load %arg3[%c0, %c0_0] : memref<768x32xbf16, #tpu.memory_space<vmem>>, vector<768x32xbf16>
    %c0_1 = arith.constant 0 : index
    %c0_2 = arith.constant 0 : index
    %1 = vector.load %arg4[%c0_1, %c0_2] : memref<1x32xf32, #tpu.memory_space<vmem>>, vector<1x32xf32>
    %c0_3 = arith.constant 0 : index
    %c0_4 = arith.constant 0 : index
    %2 = vector.load %arg5[%c0_3, %c0_4] : memref<32x32xf32, #tpu.memory_space<vmem>>, vector<32x32xf32>
    %c0_5 = arith.constant 0 : index
    %c0_6 = arith.constant 0 : index
    %3 = vector.load %arg6[%c0_5, %c0_6] : memref<1x32xf32, #tpu.memory_space<vmem>>, vector<1x32xf32>
    %c0_7 = arith.constant 0 : index
    %c0_8 = arith.constant 0 : index
    %4 = vector.load %arg1[%c0_7, %c0_8] : memref<24x768xbf16, #tpu.memory_space<vmem>>, vector<24x768xbf16>
    %cst = arith.constant dense<0.000000e+00> : vector<24x32xf32>
    %5 = tpu.matmul %4, %0, %cst {dimension_numbers = #tpu.dot_dimension_numbers<[1], [0], [0], [1], [0, 0, 1, 1], [], []>} : vector<24x768xbf16>, vector<768x32xbf16>, vector<24x32xf32> -> vector<24x32xf32>
    %6 = vector.broadcast %1 : vector<1x32xf32> to vector<24x32xf32>
    %7 = arith.addf %5, %6 : vector<24x32xf32>
    %cst_9 = arith.constant 0.000000e+00 : f32
    %8 = vector.broadcast %cst_9 : f32 to vector<24x32xf32>
    %9 = arith.maximumf %7, %8 : vector<24x32xf32>
    %cst_10 = arith.constant dense<0.000000e+00> : vector<24x32xf32>
    %10 = tpu.matmul %9, %2, %cst_10 {dimension_numbers = #tpu.dot_dimension_numbers<[1], [0], [0], [1], [0, 0, 1, 1], [], []>} : vector<24x32xf32>, vector<32x32xf32>, vector<24x32xf32> -> vector<24x32xf32>
    %11 = vector.broadcast %3 : vector<1x32xf32> to vector<24x32xf32>
    %12 = arith.addf %10, %11 : vector<24x32xf32>
    %13 = arith.truncf %12 : vector<24x32xf32> to vector<24x32xbf16>
    %c0_11 = arith.constant 0 : index
    %c0_12 = arith.constant 0 : index
    %14 = vector.load %arg7[%c0_11, %c0_12] : memref<24x32xbf16, #tpu.memory_space<vmem>>, vector<24x32xbf16>
    tpu.vector_store %arg7[%c0_11, %c0_12], %13 {strides = array<i32>} : memref<24x32xbf16, #tpu.memory_space<vmem>>, vector<24x32xbf16>,
    %c0_13 = arith.constant 0 : index
    %c0_14 = arith.constant 0 : index
    %15 = vector.load %arg2[%c0_13, %c0_14] : memref<8x768xbf16, #tpu.memory_space<vmem>>, vector<8x768xbf16>
    %cst_15 = arith.constant dense<0.000000e+00> : vector<8x32xf32>
    %16 = tpu.matmul %15, %0, %cst_15 {dimension_numbers = #tpu.dot_dimension_numbers<[1], [0], [0], [1], [0, 0, 1, 1], [], []>} : vector<8x768xbf16>, vector<768x32xbf16>, vector<8x32xf32> -> vector<8x32xf32>
    %17 = vector.broadcast %1 : vector<1x32xf32> to vector<8x32xf32>
    %18 = arith.addf %16, %17 : vector<8x32xf32>
    %cst_16 = arith.constant 0.000000e+00 : f32
    %19 = vector.broadcast %cst_16 : f32 to vector<8x32xf32>
    %20 = arith.maximumf %18, %19 : vector<8x32xf32>
    %cst_17 = arith.constant dense<0.000000e+00> : vector<8x32xf32>
    %21 = tpu.matmul %20, %2, %cst_17 {dimension_numbers = #tpu.dot_dimension_numbers<[1], [0], [0], [1], [0, 0, 1, 1], [], []>} : vector<8x32xf32>, vector<32x32xf32>, vector<8x32xf32> -> vector<8x32xf32>
    %22 = vector.broadcast %3 : vector<1x32xf32> to vector<8x32xf32>
    %23 = arith.addf %21, %22 : vector<8x32xf32>
    %24 = arith.truncf %23 : vector<8x32xf32> to vector<8x32xbf16>
    %c0_18 = arith.constant 0 : index
    %c0_19 = arith.constant 0 : index
    %25 = vector.load %arg8[%c0_18, %c0_19] : memref<8x32xbf16, #tpu.memory_space<vmem>>, vector<8x32xbf16>
    tpu.vector_store %arg8[%c0_18, %c0_19], %24 {strides = array<i32>} : memref<8x32xbf16, #tpu.memory_space<vmem>>, vector<8x32xbf16>,
    return
  }
  func.func @transform_0(%arg0: i32) -> (i32, i32) {
    %c0_i32 = arith.constant 0 : i32
    %c0_i32_0 = arith.constant 0 : i32
    return %arg0, %c0_i32 : i32, i32
  }
  func.func @transform_1(%arg0: i32) -> (i32, i32) {
    %c0_i32 = arith.constant 0 : i32
    %c0_i32_0 = arith.constant 0 : i32
    return %arg0, %c0_i32 : i32, i32
  }
  func.func @transform_2(%arg0: i32) -> (i32, i32) {
    %c0_i32 = arith.constant 0 : i32
    %c0_i32_0 = arith.constant 0 : i32
    %c0_i32_1 = arith.constant 0 : i32
    return %c0_i32, %c0_i32_0 : i32, i32
  }
  func.func @transform_3(%arg0: i32) -> (i32, i32) {
    %c0_i32 = arith.constant 0 : i32
    %c0_i32_0 = arith.constant 0 : i32
    %c0_i32_1 = arith.constant 0 : i32
    return %c0_i32, %c0_i32_0 : i32, i32
  }
  func.func @transform_4(%arg0: i32) -> (i32, i32) {
    %c0_i32 = arith.constant 0 : i32
    %c0_i32_0 = arith.constant 0 : i32
    %c0_i32_1 = arith.constant 0 : i32
    return %c0_i32, %c0_i32_0 : i32, i32
  }
  func.func @transform_5(%arg0: i32) -> (i32, i32) {
    %c0_i32 = arith.constant 0 : i32
    %c0_i32_0 = arith.constant 0 : i32
    %c0_i32_1 = arith.constant 0 : i32
    return %c0_i32, %c0_i32_0 : i32, i32
  }
  func.func @transform_6(%arg0: i32) -> (i32, i32) {
    %c0_i32 = arith.constant 0 : i32
    %c0_i32_0 = arith.constant 0 : i32
    return %arg0, %c0_i32 : i32, i32
  }
  func.func @transform_7(%arg0: i32) -> (i32, i32) {
    %c0_i32 = arith.constant 0 : i32
    %c0_i32_0 = arith.constant 0 : i32
    return %arg0, %c0_i32 : i32, i32
  }
}

</mosaic_0001>

<bundles_post_ra>
// kernel: tpu_custom_call.1
= control target key start
LH: loop header
LB: loop body
LE: loop exit
PB: predicated region body
PF: predicated region fallthrough
CT: control target
= control target key end

     0   :  { %13 = vsyncpa [#allocation3], 0  ;;  %s1853_s0 = inlined_call_operand.vmem [shape: bf16[24,768], index: 0, kind: input, shape index: {}]   ;;  %s1854_s1 = inlined_call_operand.vmem [shape: bf16[8,768], index: 1, kind: input, shape index: {}]   ;;  %s1855_s2 = inlined_call_operand.vmem [shape: bf16[768,32], index: 2, kind: input, shape index: {}]   ;;  %s1856_s3 = inlined_call_operand.vmem [shape: f32[1,32], index: 3, kind: input, shape index: {}]   ;;  %s1857_s4 = inlined_call_operand.vmem [shape: f32[32,32], index: 4, kind: input, shape index: {}]   ;;  %s1858_s5 = inlined_call_operand.vmem [shape: f32[1,32], index: 5, kind: input, shape index: {}]   ;;  %s1859_s6 = inlined_call_operand.hbm [shape: bf16[24,32], index: 6, kind: output, shape index: {0}]   ;;  %s1860_s7 = inlined_call_operand.hbm [shape: bf16[8,32], index: 7, kind: output, shape index: {1}]  }
   0x1   :  { %v1430_v0 = vld [vmem:[%s1855_s2 + $0x78] sm:$0xff]   ;;  %v1453_v4 = vld [vmem:[%s1855_s2 + $0x70] sm:$0xff]   ;;  %v1477_v8 = vld [vmem:[%s1855_s2 + $0x68] sm:$0xff]  }
   0x2   :  { %v1435_v1 = vld [vmem:[%s1855_s2 + $0x38] sm:$0xff]   ;;  %1072 = vmatprep.subr.bf16.mxu0 %v1430_v0  ;;  %v1459_v5 = vld [vmem:[%s1855_s2 + $0x30] sm:$0xff]   ;;  %v1483_v9 = vld [vmem:[%s1855_s2 + $0x28] sm:$0xff]  }
   0x3   :  { %v1441_v2 = vld [vmem:[%s1855_s2 + $0xf8] sm:$0xff]   ;;  %1073 = vmatpush3.bf16.msra.mxu0 %v1435_v1  ;;  %v1465_v6 = vld [vmem:[%s1855_s2 + $0xf0] sm:$0xff]   ;;  %v1489_v10 = vld [vmem:[%s1855_s2 + $0xe8] sm:$0xff]  }
   0x4   :  { %v1447_v3 = vld [vmem:[%s1855_s2 + $0xb8] sm:$0xff]   ;;  %1100 = vmatprep.subr.bf16.mxu1 %v1441_v2  ;;  %1074 = vmatprep.subr.bf16.mxu0 %v1453_v4  ;;  %v1471_v7 = vld [vmem:[%s1855_s2 + $0xb0] sm:$0xff]   ;;  %v1495_v11 = vld [vmem:[%s1855_s2 + $0xa8] sm:$0xff]  }
   0x5   :  { %1101 = vmatpush3.bf16.msra.mxu1 %v1447_v3  ;;  %v1501_v12 = vld [vmem:[%s1855_s2 + $0x60] sm:$0xff]   ;;  %v1525_v16 = vld [vmem:[%s1855_s2 + $0x58] sm:$0xff]   ;;  %v1549_v20 = vld [vmem:[%s1855_s2 + $0x50] sm:$0xff]  }
   0x6   :  { %1102 = vmatprep.subr.bf16.mxu1 %v1465_v6  ;;  %v1507_v13 = vld [vmem:[%s1855_s2 + $0x20] sm:$0xff]   ;;  %v1531_v17 = vld [vmem:[%s1855_s2 + $0x18] sm:$0xff]   ;;  %v1555_v21 = vld [vmem:[%s1855_s2 + $0x10] sm:$0xff]  }
   0x7   :  { %1075 = vmatpush3.bf16.msra.mxu0 %v1459_v5  ;;  %v1513_v14 = vld [vmem:[%s1855_s2 + $0xe0] sm:$0xff]   ;;  %v1537_v18 = vld [vmem:[%s1855_s2 + $0xd8] sm:$0xff]   ;;  %v1561_v22 = vld [vmem:[%s1855_s2 + $0xd0] sm:$0xff]  }
   0x8   :  { %1076 = vmatprep.subr.bf16.mxu0 %v1477_v8  ;;  %v1519_v15 = vld [vmem:[%s1855_s2 + $0xa0] sm:$0xff]   ;;  %v1543_v19 = vld [vmem:[%s1855_s2 + $0x98] sm:$0xff]   ;;  %v1567_v23 = vld [vmem:[%s1855_s2 + $0x90] sm:$0xff]  }
   0x9   :  { %1103 = vmatpush3.bf16.msra.mxu1 %v1471_v7  ;;  %v1573_v24 = vld [vmem:[%s1855_s2 + $0x48] sm:$0xff]   ;;  %v1597_v28 = vld [vmem:[%s1855_s2 + $0x40] sm:$0xff]   ;;  %v1627_v34 = vld [vmem:[%s1855_s2 + $0x178] sm:$0xff]  }
   0xa   :  { %1104 = vmatprep.subr.bf16.mxu1 %v1489_v10  ;;  %v1579_v25 = vld [vmem:[%s1855_s2 + $0x8] sm:$0xff]   ;;  %v1603_v29 = vld [vmem:[%s1855_s2] sm:$0xff]   ;;  %v1640_v37 = vld [vmem:[%s1855_s2 + $0x138] sm:$0xff]  }
   0xb   :  { %1077 = vmatpush3.bf16.msra.mxu0 %v1483_v9  ;;  %v1585_v26 = vld [vmem:[%s1855_s2 + $0xc8] sm:$0xff]   ;;  %v1609_v30 = vld [vmem:[%s1855_s2 + $0xc0] sm:$0xff]   ;;  %v1645_v38 = vld [vmem:[%s1855_s2 + $0x170] sm:$0xff]  }
   0xc   :  { %1078 = vmatprep.subr.bf16.mxu0 %v1501_v12  ;;  %v1591_v27 = vld [vmem:[%s1855_s2 + $0x88] sm:$0xff]   ;;  %v1299_v31 = vld [vmem:[%s1853_s0] ss:$24 sps:$4 sm:$0xff]   ;;  %v1301_v32 = vld [vmem:[%s1853_s0 + $0x4] ss:$24 sps:$4 sm:$0xff]  }
   0xd   :  { %1105 = vmatpush3.bf16.msra.mxu1 %v1495_v11  ;;  %v1622_v33 = vld [vmem:[%s1855_s2 + $0x80] sm:$0xff]   ;;  %516 = vmatprep.mubr.bf16.mxu0 %v1301_v32  ;;  %v1651_v39 = vld [vmem:[%s1855_s2 + $0x130] sm:$0xff]   ;;  %v1657_v40 = vld [vmem:[%s1855_s2 + $0x168] sm:$0xff]  }
   0xe   :  { %1106 = vmatprep.subr.bf16.mxu1 %v1513_v14  ;;  %v1304_v35 = vld [vmem:[%s1853_s0 + $0x8] ss:$24 sps:$4 sm:$0xff]   ;;  %v1306_v36 = vld [vmem:[%s1853_s0 + $0xc] ss:$24 sps:$4 sm:$0xff]   ;;  %v136_v43 = vld [vmem:[%s1853_s0 + $0x30] sm:$0xff] }
   0xf   :  { %1079 = vmatpush3.bf16.msra.mxu0 %v1507_v13  ;;  %564 = vmatprep.mubr.bf16.mxu1 %v1306_v36  ;;  %v1663_v41 = vld [vmem:[%s1855_s2 + $0x128] sm:$0xff]   ;;  %v1669_v42 = vld [vmem:[%s1855_s2 + $0x160] sm:$0xff]   ;;  %v1002_v44 = vcombine.high %v136_v43, %v136_v43  ;;  %v1001_v45 = vcombine.low %v136_v43, %v136_v43  ;;  %v1683_v47 = vld [vmem:[%s1855_s2 + $0x158] sm:$0xff]  }
  0x10   :  { %1080 = vmatprep.subr.bf16.mxu0 %v1525_v16  ;;  %v1677_v46 = vld [vmem:[%s1855_s2 + $0x120] sm:$0xff]   ;;  %v137_v48 = vld [vmem:[%s1853_s0 + $0x38] sm:$0xff]  ;;  %v1699_v52 = vld [vmem:[%s1855_s2 + $0x150] sm:$0xff]  }
  0x11   :  { %1107 = vmatpush3.bf16.msra.mxu1 %v1519_v15  ;;  %v1004_v49 = vcombine.high %v137_v48, %v137_v48  ;;  %v1003_v50 = vcombine.low %v137_v48, %v137_v48  ;;  %v1693_v51 = vld [vmem:[%s1855_s2 + $0x118] sm:$0xff]   ;;  %v1328_v53 = vld [vmem:[%s1853_s0 + $0x14] ss:$24 sps:$4 sm:$0xff]  }
  0x12   :  { %1108 = vmatprep.subr.bf16.mxu1 %v1537_v18 }
  0x13   :  { %1081 = vmatpush3.bf16.msra.mxu0 %v1531_v17 }
  0x14   :  { %1082 = vmatprep.subr.bf16.mxu0 %v1549_v20 }
  0x15   :  { %1109 = vmatpush3.bf16.msra.mxu1 %v1543_v19 }
  0x16   :  { %1110 = vmatprep.subr.bf16.mxu1 %v1561_v22 }
  0x17   :  { %1083 = vmatpush3.bf16.msra.mxu0 %v1555_v21 }
  0x18   :  { %1084 = vmatprep.subr.bf16.mxu0 %v1573_v24 }
  0x19   :  { %1111 = vmatpush3.bf16.msra.mxu1 %v1567_v23 }
  0x1a   :  { %1112 = vmatprep.subr.bf16.mxu1 %v1585_v26 }
  0x1b   :  { %1085 = vmatpush3.bf16.msra.mxu0 %v1579_v25 }
  0x1c   :  { %1086 = vmatprep.subr.bf16.mxu0 %v1597_v28 }
  0x1d   :  { %1113 = vmatpush3.bf16.msra.mxu1 %v1591_v27 }
  0x1e   :  { %1114 = vmatprep.subr.bf16.mxu1 %v1609_v30 }
  0x1f   :  { %1087 = vmatpush3.bf16.msra.mxu0 %v1603_v29 }
  0x20   :  { %1128 = vmatprep.subr.bf16.mxu0 %v1627_v34 }
  0x21   :  { %1115 = vmatpush3.bf16.msra.mxu1 %v1622_v33 }
  0x22   :  { %517 = vmatmul.mubr.bf16.vlgmr.msra.gmra.mxu0 %v1299_v31 }
  0x23   :  { %1129 = vmatpush3.bf16.msra.mxu0 %v1640_v37  ;;  %524 = vmatprep.mubr.bf16.mxu0 %v1002_v44 }
  0x24   :  { %565 = vmatmul.mubr.bf16.vlgmr.msra.gmra.mxu1 %v1304_v35  ;;  %1130 = vmatprep.subr.bf16.mxu0 %v1645_v38 }
  0x25   :  { %572 = vmatprep.mubr.bf16.mxu1 %v1004_v49 }
  0x27   :  { %1131 = vmatpush3.bf16.msra.mxu0 %v1651_v39 }
  0x28   :  { %1132 = vmatprep.subr.bf16.mxu0 %v1657_v40 }
  0x2a   :  { %525 = vmatmul.mubr.bf16.gmra.mxu0 %v1001_v45 }
  0x2b   :  { %1133 = vmatpush3.bf16.msra.mxu0 %v1663_v41 }
  0x2c   :  { %1134 = vmatprep.subr.bf16.mxu0 %v1669_v42  ;;  %573 = vmatmul.mubr.bf16.gmra.mxu1 %v1003_v50 }
  0x2f   :  { %1135 = vmatpush3.bf16.msra.mxu0 %v1677_v46 }
  0x30   :  { %1136 = vmatprep.subr.bf16.mxu0 %v1683_v47 }
  0x31   :  { %14 = vsyncpa [#allocation5], 0  ;;  %v1708_v54 = vld [vmem:[%s1855_s2 + $0x110] sm:$0xff]   ;;  %612 = vmatprep.mubr.bf16.mxu0 %v1328_v53  ;;  %v1714_v55 = vld [vmem:[%s1855_s2 + $0x148] sm:$0xff]   ;;  %vm1382_vm0 = vmmov 0   ;;  %vm637_vm1 = vcmask 261120  }
  0x32   :  { %v1720_v56 = vld [vmem:[%s1855_s2 + $0x108] sm:$0xff]   ;;  %v1726_v57 = vld [vmem:[%s1855_s2 + $0x140] sm:$0xff]   ;;  %v128_v63 = vld [vmem:[%s1857_s4 + $0x18] sm:$0xff]  ;;  %vm740_vm2 = vcmask 257024  }
  0x33   :  { %1137 = vmatpush3.bf16.msra.mxu0 %v1693_v51  ;;  %v1732_v58 = vld [vmem:[%s1855_s2 + $0x100] sm:$0xff]   ;;  %v1326_v60 = vld [vmem:[%s1853_s0 + $0x10] ss:$24 sps:$4 sm:$0xff]  }
  0x34   :  { %1138 = vmatprep.subr.bf16.mxu0 %v1699_v52  ;;  %v138_v59 = vld [vmem:[%s1853_s0 + $0x40] sm:$0xff] }
  0x35   :  { %v1006_v61 = vcombine.high %v138_v59, %v138_v59  ;;  %v1005_v62 = vcombine.low %v138_v59, %v138_v59  ;;  %v1789_v48 = vld [vmem:[%s1856_s3] ss:$0 sm:$0xff] }
  0x37   :  { %1139 = vmatpush3.bf16.msra.mxu0 %v1708_v54 }
  0x38   :  { %1140 = vmatprep.subr.bf16.mxu0 %v1714_v55 }
  0x3b   :  { %1141 = vmatpush3.bf16.msra.mxu0 %v1720_v56 }
  0x3c   :  { %1142 = vmatprep.subr.bf16.mxu0 %v1726_v57 }
  0x3f   :  { %1143 = vmatpush3.bf16.msra.mxu0 %v1732_v58 }
  0x40   :  { %1185 = vmatprep.subr.bf16.mxu0 %v1441_v2  ;;  %v1381_v2 = vmov 0.0  }
  0x41   :  { %1234 = vmatprep.subr.mxu1 %v1381_v2  ;;  %1242 = vmatprep.mubr.msk.f32.mxu1 %vm1382_vm0, %v1381_v2 }
  0x42   :  { %613 = vmatmul.mubr.bf16.vlgmr.msra.gmra.mxu0 %v1326_v60  ;;  %1235 = vmatpush3.msra.mxu1 %v128_v63 }
  0x43   :  { %620 = vmatprep.mubr.bf16.mxu0 %v1006_v61  ;;  %1186 = vmatpush3.bf16.msra.mxu0 %v1447_v3  ;;  %v127_v3 = vld [vmem:[%s1857_s4 + $0x10] sm:$0xff] }
  0x44   :  { %1187 = vmatprep.subr.bf16.mxu0 %v1465_v6  ;;  %1236 = vmatprep.subr.mxu1 %v1381_v2  ;;  %v126_v6 = vld [vmem:[%s1857_s4 + $0x8] sm:$0xff] }
  0x45   :  { %1237 = vmatpush3.msra.mxu1 %v127_v3 }
  0x46   :  { %1238 = vmatprep.subr.mxu1 %v1381_v2 }
  0x47   :  { %1188 = vmatpush3.bf16.msra.mxu0 %v1471_v7  ;;  %1239 = vmatpush3.msra.mxu1 %v126_v6  ;;  %v125_v7 = vld [vmem:[%s1857_s4] sm:$0xff] }
  0x48   :  { %1189 = vmatprep.subr.bf16.mxu0 %v1489_v10  ;;  %1240 = vmatprep.subr.mxu1 %v1381_v2  ;;  %v745_v10 = vld [vmem:[%s1854_s1 + $0x8] sm:$0xff] }
  0x49   :  { %1241 = vmatpush3.msra.mxu1 %v125_v7 }
  0x4a   :  { %621 = vmatmul.mubr.bf16.gmra.mxu0 %v1005_v62  ;;  %1163 = vmatprep.subr.bf16.mxu1 %v1430_v0 }
  0x4b   :  { %1190 = vmatpush3.bf16.msra.mxu0 %v1495_v11  ;;  %v1065_v11 = vcombine.high %v745_v10, %v745_v10 }
  0x4c   :  { %1191 = vmatprep.subr.bf16.mxu0 %v1513_v14  ;;  %v1064_v14 = vcombine.low %v745_v10, %v745_v10 }
  0x4d   :  { %840 = vmatprep.mubr.bf16.mxu0 %v1065_v11 }
  0x4f   :  { %1192 = vmatpush3.bf16.msra.mxu0 %v1519_v15 }
  0x50   :  { %1193 = vmatprep.subr.bf16.mxu0 %v1537_v18 }
  0x53   :  { %1194 = vmatpush3.bf16.msra.mxu0 %v1543_v19 }
  0x54   :  { %1195 = vmatprep.subr.bf16.mxu0 %v1561_v22 }
  0x57   :  { %1196 = vmatpush3.bf16.msra.mxu0 %v1567_v23 }
  0x58   :  { %1197 = vmatprep.subr.bf16.mxu0 %v1585_v26 }
  0x5b   :  { %1198 = vmatpush3.bf16.msra.mxu0 %v1591_v27 }
  0x5c   :  { %1199 = vmatprep.subr.bf16.mxu0 %v1609_v30 }
  0x5f   :  { %1200 = vmatpush3.bf16.msra.mxu0 %v1622_v33 }
  0x60   :  { %1251 = vmatprep.subr.mxu0 %v1381_v2 }
  0x62   :  { %841 = vmatmul.mubr.bf16.vlgmr.msra.gmra.mxu0 %v1064_v14 }
  0x63   :  { %1252 = vmatpush3.msra.mxu0 %v128_v63  ;;  %1259 = vmatprep.mubr.msk.f32.mxu0 %vm1382_vm0, %v1381_v2 }
  0x64   :  { %1253 = vmatprep.subr.mxu0 %v1381_v2 }
  0x65   :  { %1254 = vmatpush3.msra.mxu0 %v127_v3 }
  0x66   :  { %1255 = vmatprep.subr.mxu0 %v1381_v2 }
  0x67   :  { %1256 = vmatpush3.msra.mxu0 %v126_v6 }
  0x68   :  { %1257 = vmatprep.subr.mxu0 %v1381_v2 }
  0x69   :  { %1258 = vmatpush3.msra.mxu0 %v125_v7 }
  0xe2   :  { %v1088_v0 = vpop.f32.mrf.mxu0 }
  0xe4   :  { %v1089_v15 = vpop.f32.mrf.mxu0  ;;  %v1116_v18 = vpop.f32.mrf.mxu1 }
  0xe5   :  { %v1090_v45 = vadd.f32 %v1089_v15, %v1088_v0 }
  0xe6   :  { %v1091_v19 = vpop.f32.mrf.mxu0  ;;  %v1117_v22 = vpop.f32.mrf.mxu1 }
  0xe7   :  { %v519_v50 = vadd.f32 %v1090_v45, %v1789_v48  ;;  %v1118_v53 = vadd.f32 %v1117_v22, %v1116_v18 }
  0xe8   :  { %v1092_v23 = vpop.f32.mrf.mxu0  ;;  %v1119_v26 = vpop.f32.mrf.mxu1 }
  0xe9   :  { %v1093_v49 = vadd.f32 %v1092_v23, %v1091_v19  ;;  %v567_v63 = vadd.f32 %v1118_v53, %v519_v50 }
  0xea   :  { %v1094_v27 = vpop.f32.mrf.mxu0  ;;  %v1120_v30 = vpop.f32.mrf.mxu1 }
  0xeb   :  { %v522_v60 = vadd.f32 %v1093_v49, %v1789_v48  ;;  %v1121_v61 = vadd.f32 %v1120_v30, %v1119_v26 }
  0xec   :  { %v1095_v31 = vpop.f32.mrf.mxu0  ;;  %v1122_v33 = vpop.f32.mrf.mxu1 }
  0xed   :  { %v1096_v3 = vadd.f32 %v1095_v31, %v1094_v27  ;;  %v570_v11 = vadd.f32 %v1121_v61, %v522_v60  ;;  %v744_v31 = vld [vmem:[%s1854_s1] sm:$0xff] }
  0xee   :  { %v1097_v32 = vpop.f32.mrf.mxu0  ;;  %v1123_v36 = vpop.f32.mrf.mxu1 }
  0xef   :  { %v527_v0 = vadd.f32 %v1096_v3, %v1789_v48  ;;  %v1124_v15 = vadd.f32 %v1123_v36, %v1122_v33  ;;  %v1063_v36 = vcombine.high %v744_v31, %v744_v31 }
  0xf0   :  { %v1098_v35 = vpop.f32.mrf.mxu0  ;;  %v1125_v43 = vpop.f32.mrf.mxu1 }
  0xf1   :  { %v575_v26 = vadd.f32 %v1124_v15, %v527_v0 }
  0xf2   :  { %v1126_v44 = vpop.f32.mrf.mxu1 }
 0x102   :  { %v1144_v59 = vpop.f32.mrf.mxu0 }
 0x104   :  { %v1145_v62 = vpop.f32.mrf.mxu0 }
 0x105   :  { %v1146_v6 = vadd.f32 %v1145_v62, %v1144_v59 }
 0x106   :  { %v1147_v7 = vpop.f32.mrf.mxu0 }
 0x107   :  { %v615_v10 = vadd.f32 %v1146_v6, %v567_v63 }
 0x108   :  { %v1148_v14 = vpop.f32.mrf.mxu0 }
 0x109   :  { %v628_v19 = vmax.f32 %v615_v10, 0.0  ;;  %v1149_v23 = vadd.f32 %v1148_v14, %v1147_v7 }
 0x10a   :  { %v1150_v32 = vpop.f32.mrf.mxu0 }
 0x10b   :  { %v618_v18 = vadd.f32 %v1149_v23, %v570_v11  ;;  %1243 = vmatmul.mubr.msk.f32.vlgmr.msra.gmra.mxu1 %vm637_vm1, %v628_v19 }
 0x10c   :  { %1164 = vmatpush3.bf16.msra.mxu1 %v1435_v1  ;;  %v1151_v22 = vpop.f32.mrf.mxu0  ;;  %1245 = vmatprep.mubr.msk.f32.mxu1 %vm1382_vm0, %v1381_v2 }
 0x10d   :  { %v629_v27 = vmax.f32 %v618_v18, 0.0  ;;  %v1152_v30 = vadd.f32 %v1151_v22, %v1150_v32  ;;  %1165 = vmatprep.subr.bf16.mxu1 %v1453_v4  ;;  %v746_v4 = vld [vmem:[%s1854_s1 + $0x10] sm:$0xff] }
 0x10e   :  { %v1153_v33 = vpop.f32.mrf.mxu0 }
 0x10f   :  { %v623_v35 = vadd.f32 %v1152_v30, %v575_v26  ;;  %1246 = vmatmul.mubr.msk.f32.gmra.mxu1 %vm637_vm1, %v629_v27 }
 0x110   :  { %1166 = vmatpush3.bf16.msra.mxu1 %v1459_v5  ;;  %1248 = vmatprep.mubr.msk.f32.mxu1 %vm1382_vm0, %v1381_v2  ;;  %v1154_v1 = vpop.f32.mrf.mxu0  ;;  %v1062_v5 = vcombine.low %v744_v31, %v744_v31 }
 0x111   :  { %v630_v43 = vmax.f32 %v623_v35, 0.0  ;;  %1167 = vmatprep.subr.bf16.mxu1 %v1477_v8  ;;  %v1067_v8 = vcombine.high %v746_v4, %v746_v4 }
 0x113   :  { %1249 = vmatmul.mubr.msk.f32.gmra.mxu1 %vm637_vm1, %v630_v43 }
 0x114   :  { %1168 = vmatpush3.bf16.msra.mxu1 %v1483_v9  ;;  %800 = vmatprep.mubr.bf16.mxu1 %v1063_v36  ;;  %v1066_v9 = vcombine.low %v746_v4, %v746_v4 }
 0x115   :  { %1169 = vmatprep.subr.bf16.mxu1 %v1501_v12 }
 0x118   :  { %1170 = vmatpush3.bf16.msra.mxu1 %v1507_v13 }
 0x119   :  { %1171 = vmatprep.subr.bf16.mxu1 %v1525_v16 }
 0x11c   :  { %1172 = vmatpush3.bf16.msra.mxu1 %v1531_v17 }
 0x11d   :  { %1173 = vmatprep.subr.bf16.mxu1 %v1549_v20 }
 0x120   :  { %1174 = vmatpush3.bf16.msra.mxu1 %v1555_v21  ;;  %v1055_v21 = vld [vmem:[%s1858_s5] ss:$0 sm:$0xff]  ;;  %s1383_s5 = smov [#allocation2]  }
 0x121   :  { %1175 = vmatprep.subr.bf16.mxu1 %v1573_v24  ;;  %s969_s13 = sshll.u32 %s1383_s5, 4  ;;  %s970_s13 = int_to_ptr.vmem [resolvable:$true] %s969_s13 }
 0x122   :  { %v1201_v12 = vpop.f32.mrf.mxu0  ;;  %s1337_s14 = scalar_lea.vmem %s970_s13, 192  ;;  %p1342_p1 = scmp.lt.s32.totalorder %s970_s13, %s970_s13 }
 0x123   :  { %p1338_p0 = scmp.ne.s32.totalorder %s970_s13, %s1337_s14  ;;  %p1343_p2 = scmp.lt.s32.totalorder %s1337_s14, %s1337_s14 }
 0x124   :  { %1176 = vmatpush3.bf16.msra.mxu1 %v1579_v25  ;;  %v1202_v13 = vpop.f32.mrf.mxu0 }
 0x125   :  { %1177 = vmatprep.subr.bf16.mxu1 %v1597_v28  ;;  %v1203_v16 = vadd.f32 %v1202_v13, %v1201_v12  ;;  %p1344_p3 = por %p1343_p2, %p1342_p1 }
 0x126   :  { %v1204_v17 = vpop.f32.mrf.mxu0 }
 0x127   :  { %p1345_p4 = pnand %p1344_p3, %p1338_p0 }
 0x128   :  { %1178 = vmatpush3.bf16.msra.mxu1 %v1603_v29  ;;  %v1205_v20 = vpop.f32.mrf.mxu0 }
 0x129   :  { %1207 = vmatprep.subr.bf16.mxu1 %v1627_v34 }
 0x12b   :  { %801 = vmatmul.mubr.bf16.vlgmr.msra.gmra.mxu1 %v1062_v5 }
 0x12c   :  { %1208 = vmatpush3.bf16.msra.mxu1 %v1640_v37  ;;  %880 = vmatprep.mubr.bf16.mxu1 %v1067_v8 }
 0x12d   :  { %1209 = vmatprep.subr.bf16.mxu1 %v1645_v38 }
 0x130   :  { %1210 = vmatpush3.bf16.msra.mxu1 %v1651_v39 }
 0x131   :  { %1211 = vmatprep.subr.bf16.mxu1 %v1657_v40 }
 0x134   :  { %1212 = vmatpush3.bf16.msra.mxu1 %v1663_v41 }
 0x135   :  { %1213 = vmatprep.subr.bf16.mxu1 %v1669_v42 }
 0x138   :  { %1214 = vmatpush3.bf16.msra.mxu1 %v1677_v46 }
 0x139   :  { %1215 = vmatprep.subr.bf16.mxu1 %v1683_v47 }
 0x13c   :  { %1216 = vmatpush3.bf16.msra.mxu1 %v1693_v51 }
 0x13d   :  { %1217 = vmatprep.subr.bf16.mxu1 %v1699_v52 }
 0x140   :  { %1218 = vmatpush3.bf16.msra.mxu1 %v1708_v54 }
 0x141   :  { %1219 = vmatprep.subr.bf16.mxu1 %v1714_v55 }
 0x144   :  { %1220 = vmatpush3.bf16.msra.mxu1 %v1720_v56 }
 0x145   :  { %1221 = vmatprep.subr.bf16.mxu1 %v1726_v57 }
 0x148   :  { %1222 = vmatpush3.bf16.msra.mxu1 %v1732_v58 }
 0x14b   :  { %881 = vmatmul.mubr.bf16.vlgmr.msra.gmra.mxu1 %v1066_v9 }
 0x1cb   :  { %v713_v24 = vpop.f32.mrf.mxu1 }
 0x1cc   :  { %v714_v25 = vadd.f32 %v1055_v21, %v713_v24 }
 0x1cd   :  { %v1244_v28 = vpop.f32.mrf.mxu1 }
 0x1ce   :  { %v1069_v29 = vpack.c.bf16 %v714_v25, %v714_v25 }
 0x1cf   :  { %v718_v34 = vpop.f32.mrf.mxu1 }
 0x1d0   :  { %741 = vst.msk [vmem:[#allocation2] sm:$0xf] %vm740_vm2, %v1069_v29  ;;  %v719_v37 = vadd.f32 %v1055_v21, %v718_v34 }
 0x1d1   :  { %v1247_v38 = vpop.f32.mrf.mxu1 }
 0x1d2   :  { %v1070_v39 = vpack.c.bf16 %v719_v37, %v719_v37 }
 0x1d3   :  { %v723_v40 = vpop.f32.mrf.mxu1 }
 0x1d4   :  { %742 = vst.msk [vmem:[#allocation2 + $0x4] sm:$0xf] %vm740_vm2, %v1070_v39  ;;  %v724_v41 = vadd.f32 %v1055_v21, %v723_v40 }
 0x1d5   :  { %v1250_v42 = vpop.f32.mrf.mxu1 }
 0x1d6   :  { %v1071_v46 = vpack.c.bf16 %v724_v41, %v724_v41 }
 0x1d8   :  { %743 = vst.msk [vmem:[#allocation2 + $0x8] sm:$0xf] %vm740_vm2, %v1071_v46 }
 0x1eb   :  { %v1179_v47 = vpop.f32.mrf.mxu1 }
 0x1ed   :  { %v1180_v51 = vpop.f32.mrf.mxu1 }
 0x1ee   :  { %v1181_v55 = vadd.f32 %v1180_v51, %v1179_v47 }
 0x1ef   :  { %v1182_v52 = vpop.f32.mrf.mxu1 }
 0x1f0   :  { %v803_v56 = vadd.f32 %v1181_v55, %v1789_v48 }
 0x1f1   :  { %v1183_v54 = vpop.f32.mrf.mxu1 }
 0x1f2   :  { %v843_v2 = vadd.f32 %v1203_v16, %v803_v56 }
 0x20b   :  { %v1223_v57 = vpop.f32.mrf.mxu1 }
 0x20d   :  { %v1224_v58 = vpop.f32.mrf.mxu1 }
 0x20e   :  { %v1225_v44 = vadd.f32 %v1224_v58, %v1223_v57 }
 0x20f   :  { %v1226_v45 = vpop.f32.mrf.mxu1 }
 0x210   :  { %v883_v49 = vadd.f32 %v1225_v44, %v843_v2 }
 0x211   :  { %v1227_v50 = vpop.f32.mrf.mxu1 }
 0x212   :  { %v888_v53 = vmax.f32 %v883_v49, 0.0 }
 0x214   :  { %1260 = vmatmul.mubr.msk.f32.vlgmr.msra.gmra.mxu0 %vm637_vm1, %v888_v53 }
 0x215   :  { %1348 = shalt.err (!%p1345_p4)
}
 0x216   :  { %s1384_s15 = smov 64   ;;  %s1385_s16 = smov 4  }
 0x217   :  { %975 = dma.vmem_to_hbm [thread:$0]  %s970_s13, 192, %s1859_s6, [#allocation3], %s1384_s15, %s1384_s15, %s1385_s16  }
 0x218   :  { %s1386_s19 = smov [#allocation4]  }
 0x219   :  { %s982_s20 = sshll.u32 %s1386_s19, 4  ;;  %s983_s20 = int_to_ptr.vmem [resolvable:$true] %s982_s20 }
 0x21a   :  { %s1357_s21 = scalar_lea.vmem %s983_s20, 64  ;;  %p1362_p6 = scmp.lt.s32.totalorder %s983_s20, %s983_s20 }
 0x21b   :  { %p1358_p5 = scmp.ne.s32.totalorder %s983_s20, %s1357_s21  ;;  %p1363_p7 = scmp.lt.s32.totalorder %s1357_s21, %s1357_s21 }
 0x21d   :  { %p1364_p8 = por %p1363_p7, %p1362_p6 }
 0x21f   :  { %p1365_p9 = pnand %p1364_p8, %p1358_p5 }
 0x2d4   :  { %v958_v48 = vpop.f32.mrf.mxu0 }
 0x2d5   :  { %v959_v59 = vadd.f32 %v1055_v21, %v958_v48 }
 0x2d6   :  { %v1261_v60 = vpop.f32.mrf.mxu0 }
 0x2d7   :  { %v962_v61 = vpack.c.bf16 %v959_v59, %v959_v59 }
 0x2d9   :  { %963 = vst.msk [vmem:[#allocation4] sm:$0xf] %vm740_vm2, %v962_v61 }
 0x2da   :  { %1368 = shalt.err (!%p1365_p9)
}
 0x2db   :  { %985 = dma.vmem_to_hbm [thread:$0]  %s983_s20, 64, %s1860_s7, [#allocation5]  }
 0x2dc   :  { %1377 = dma.done.wait [#allocation3], 192  }
 0x2dd   :  { %1378 = vsyncadd [#allocation3], 4294967104 }
 0x2de   :  { %1379 = dma.done.wait [#allocation5], 64  }
 0x2df   :  { %1380 = vsyncadd [#allocation5], 4294967232 }
 0x2e0   :  { %992 = vsyncpa [#allocation3], 1 }
 0x2e1   :  { %993 = vsyncpa [#allocation5], 1 }

</bundles_post_ra>
